<compile_context>
chip_gen: v5e
topology: v5e:2x2
jax: 0.10.0
libtpu: 0.0.40
codegen_flags: <defaults>
</compile_context>

<pallas_src>
import math

import jax
import jax.numpy as jnp
import numpy as np
from jax.experimental import pallas as pl
from jax.experimental.pallas import tpu as pltpu

# -------------------- config (mirrors the torch `config`) --------------------
D_MODEL = 32
D_FF = 64
NUM_HEADS = 4
D_KEY = 8
D_VALUE = 8
LN_EPS = 1e-5
BATCH = 2
SEQ = 8
HD_K = NUM_HEADS * D_KEY
HD_V = NUM_HEADS * D_VALUE
NEG_FILL = -1e30  # finite stand-in for -inf (avoids NaN if a row were fully masked)


# -------------------- fused Pallas kernel --------------------
def _layer_norm(y, gamma, beta):
    """Matches the torch module: torch.var default is UNBIASED (divide by D-1)."""
    d = y.shape[-1]
    mean = jnp.mean(y, axis=-1, keepdims=True)
    var = jnp.sum((y - mean) ** 2, axis=-1, keepdims=True) * (1.0 / (d - 1))
    return (y - mean) * jax.lax.rsqrt(var + LN_EPS) * gamma + beta


def encoder_block_kernel(x_ref, mask_ref,
                         wq_ref, bq_ref, wk_ref, bk_ref, wv_ref, bv_ref,
                         wo_ref, bo_ref, g1_ref, be1_ref,
                         w1_ref, bf1_ref, w2_ref, bf2_ref, g2_ref, be2_ref,
                         out_ref):
    """One grid step == one batch element; everything stays in VMEM/vregs."""
    x = x_ref[0]                      # (S, D)
    masked = mask_ref[0] > 0.5        # (S, S) bool, True => masked

    # ---- Q/K/V projections over the whole sequence (M = S rows per matmul) ----
    q = jnp.dot(x, wq_ref[...], preferred_element_type=jnp.float32) + bq_ref[...]
    k = jnp.dot(x, wk_ref[...], preferred_element_type=jnp.float32) + bk_ref[...]
    v = jnp.dot(x, wv_ref[...], preferred_element_type=jnp.float32) + bv_ref[...]
    q = q * (1.0 / math.sqrt(D_KEY))  # fold score scale into q once

    # ---- per-head attention with the output projection folded in:
    #      concat_h(P_h @ V_h) @ Wo  ==  sum_h P_h @ (V_h @ Wo[h*dv:(h+1)*dv, :])
    dn = (((1,), (1,)), ((), ()))     # contract trailing dims, no batch dims (no .T)
    attn = jnp.zeros((x.shape[0], D_MODEL), jnp.float32)
    for h in range(NUM_HEADS):
        qh = q[:, h * D_KEY:(h + 1) * D_KEY]          # (S, dk)
        kh = k[:, h * D_KEY:(h + 1) * D_KEY]          # (S, dk)
        vh = v[:, h * D_VALUE:(h + 1) * D_VALUE]      # (S, dv)
        s = jax.lax.dot_general(qh, kh, dn, preferred_element_type=jnp.float32)
        s = jnp.where(masked, NEG_FILL, s)
        s = s - jnp.max(s, axis=-1, keepdims=True)
        p = jnp.exp(s)
        p = p * pl.reciprocal(jnp.sum(p, axis=-1, keepdims=True))
        vo = jnp.dot(vh, wo_ref[h * D_VALUE:(h + 1) * D_VALUE, :],
                     preferred_element_type=jnp.float32)          # (S, D)
        attn = attn + jnp.dot(p, vo, preferred_element_type=jnp.float32)

    # residual + LayerNorm 1 (dropout == identity in eval mode)
    y = _layer_norm(attn + bo_ref[...] + x, g1_ref[...], be1_ref[...])

    # ---- feed forward + residual + LayerNorm 2 ----
    h1 = jnp.dot(y, w1_ref[...], preferred_element_type=jnp.float32) + bf1_ref[...]
    h1 = jnp.maximum(h1, 0.0)         # relu
    f = jnp.dot(h1, w2_ref[...], preferred_element_type=jnp.float32) + bf2_ref[...]
    out = _layer_norm(f + y, g2_ref[...], be2_ref[...])

    out_ref[...] = out[None, :, :]


# -------------------- wrapper --------------------
def _full_spec(shape):
    return pl.BlockSpec(shape, lambda b: (0,) * len(shape))


def encoder_block(x, mask, p):
    B, S, D = x.shape
    in_specs = [
        pl.BlockSpec((1, S, D), lambda b: (b, 0, 0)),
        pl.BlockSpec((1, S, S), lambda b: (b, 0, 0)),
        _full_spec(p["wq"].shape), _full_spec(p["bq"].shape),
        _full_spec(p["wk"].shape), _full_spec(p["bk"].shape),
        _full_spec(p["wv"].shape), _full_spec(p["bv"].shape),
        _full_spec(p["wo"].shape), _full_spec(p["bo"].shape),
        _full_spec(p["ln1_g"].shape), _full_spec(p["ln1_b"].shape),
        _full_spec(p["w1"].shape), _full_spec(p["b1"].shape),
        _full_spec(p["w2"].shape), _full_spec(p["b2"].shape),
        _full_spec(p["ln2_g"].shape), _full_spec(p["ln2_b"].shape),
    ]
    return pl.pallas_call(
        encoder_block_kernel,
        out_shape=jax.ShapeDtypeStruct((B, S, D), jnp.float32),
        grid=(B,),
        in_specs=in_specs,
        out_specs=pl.BlockSpec((1, S, D), lambda b: (b, 0, 0)),
        compiler_params=pltpu.CompilerParams(dimension_semantics=("parallel",)),
    )(x, mask,
      p["wq"], p["bq"], p["wk"], p["bk"], p["wv"], p["bv"], p["wo"], p["bo"],
      p["ln1_g"], p["ln1_b"], p["w1"], p["b1"], p["w2"], p["b2"],
      p["ln2_g"], p["ln2_b"])


# -------------------- pure-JAX reference (for correctness check) --------------------
def ref_ln(x, gamma, beta):
    mean = jnp.mean(x, axis=-1, keepdims=True)
    var = jnp.sum((x - mean) ** 2, axis=-1, keepdims=True) / (x.shape[-1] - 1)
    return (x - mean) / jnp.sqrt(var + LN_EPS) * gamma + beta


def ref_encoder_block(x, mask, p):
    B, S, D = x.shape
    q = x @ p["wq"] + p["bq"]
    k = x @ p["wk"] + p["bk"]
    v = x @ p["wv"] + p["bv"]
    q = q.reshape(B, S, NUM_HEADS, D_KEY).transpose(0, 2, 1, 3)
    k = k.reshape(B, S, NUM_HEADS, D_KEY).transpose(0, 2, 1, 3)
    v = v.reshape(B, S, NUM_HEADS, D_VALUE).transpose(0, 2, 1, 3)
    s = jnp.einsum("bhqd,bhkd->bhqk", q, k) / math.sqrt(D_KEY)
    s = jnp.where(mask[:, None, :, :] > 0.5, -jnp.inf, s)
    a = jax.nn.softmax(s, axis=-1)
    o = jnp.einsum("bhqk,bhkd->bhqd", a, v)
    o = o.transpose(0, 2, 1, 3).reshape(B, S, NUM_HEADS * D_VALUE)
    attn = o @ p["wo"] + p["bo"]
    y = ref_ln(attn + x, p["ln1_g"], p["ln1_b"])
    h = jnp.maximum(y @ p["w1"] + p["b1"], 0.0)
    f = h @ p["w2"] + p["b2"]
    return ref_ln(f + y, p["ln2_g"], p["ln2_b"])


# -------------------- deterministic param init --------------------
def init_params(key):
    ks = jax.random.split(key, 12)
    return {
        "wq": 0.1 * jax.random.normal(ks[0], (D_MODEL, HD_K), jnp.float32),
        "bq": 0.01 * jax.random.normal(ks[1], (1, HD_K), jnp.float32),
        "wk": 0.1 * jax.random.normal(ks[2], (D_MODEL, HD_K), jnp.float32),
        "bk": 0.01 * jax.random.normal(ks[3], (1, HD_K), jnp.float32),
        "wv": 0.1 * jax.random.normal(ks[4], (D_MODEL, HD_V), jnp.float32),
        "bv": 0.01 * jax.random.normal(ks[5], (1, HD_V), jnp.float32),
        "wo": 0.1 * jax.random.normal(ks[6], (HD_V, D_MODEL), jnp.float32),
        "bo": 0.01 * jax.random.normal(ks[7], (1, D_MODEL), jnp.float32),
        "w1": 0.1 * jax.random.normal(ks[8], (D_MODEL, D_FF), jnp.float32),
        "b1": 0.01 * jax.random.normal(ks[9], (1, D_FF), jnp.float32),
        "w2": 0.1 * jax.random.normal(ks[10], (D_FF, D_MODEL), jnp.float32),
        "b2": 0.01 * jax.random.normal(ks[11], (1, D_MODEL), jnp.float32),
        "ln1_g": jnp.ones((1, D_MODEL), jnp.float32),
        "ln1_b": jnp.zeros((1, D_MODEL), jnp.float32),
        "ln2_g": jnp.ones((1, D_MODEL), jnp.float32),
        "ln2_b": jnp.zeros((1, D_MODEL), jnp.float32),
    }


if __name__ == "__main__":
    key = jax.random.PRNGKey(0)
    k_x, k_p = jax.random.split(key, 2)

    x = jax.random.normal(k_x, (BATCH, SEQ, D_MODEL), jnp.float32)

    # padding-style source mask: batch 0 unmasked; batch 1 masks the last 2 key positions
    key_pad = (jnp.arange(SEQ) >= SEQ - 2).astype(jnp.float32)         # (S,)
    mask_b1 = jnp.broadcast_to(key_pad[None, :], (SEQ, SEQ))
    mask = jnp.stack([jnp.zeros((SEQ, SEQ), jnp.float32), mask_b1], axis=0)  # (B, S, S)

    params = init_params(k_p)

    out = encoder_block(x, mask, params)
    out = jax.block_until_ready(out)

    ref = ref_encoder_block(x, mask, params)
    np.testing.assert_allclose(np.asarray(out), np.asarray(ref), rtol=2e-4, atol=2e-4)

    print("KERNEL_OK")
</pallas_src>

<mosaic_0001>
module attributes {stable_mosaic.version = 11 : i64} {
  func.func @encoder_block_kernel(%arg0: i32, %arg1: memref<1x8x32xf32, #tpu.memory_space<vmem>>, %arg2: memref<1x8x8xf32, #tpu.memory_space<vmem>>, %arg3: memref<32x32xf32, #tpu.memory_space<vmem>>, %arg4: memref<1x32xf32, #tpu.memory_space<vmem>>, %arg5: memref<32x32xf32, #tpu.memory_space<vmem>>, %arg6: memref<1x32xf32, #tpu.memory_space<vmem>>, %arg7: memref<32x32xf32, #tpu.memory_space<vmem>>, %arg8: memref<1x32xf32, #tpu.memory_space<vmem>>, %arg9: memref<32x32xf32, #tpu.memory_space<vmem>>, %arg10: memref<1x32xf32, #tpu.memory_space<vmem>>, %arg11: memref<1x32xf32, #tpu.memory_space<vmem>>, %arg12: memref<1x32xf32, #tpu.memory_space<vmem>>, %arg13: memref<32x64xf32, #tpu.memory_space<vmem>>, %arg14: memref<1x64xf32, #tpu.memory_space<vmem>>, %arg15: memref<64x32xf32, #tpu.memory_space<vmem>>, %arg16: memref<1x32xf32, #tpu.memory_space<vmem>>, %arg17: memref<1x32xf32, #tpu.memory_space<vmem>>, %arg18: memref<1x32xf32, #tpu.memory_space<vmem>>, %arg19: memref<1x8x32xf32, #tpu.memory_space<vmem>>) attributes {dimension_semantics = [#tpu.dimension_semantics<parallel>], iteration_bounds = array<i64: 2>, scalar_prefetch = 0 : i64, scratch_operands = 0 : i64, tpu.core_type = #tpu.core_type<tc>, window_params = [{transform_indices = @transform_0, window_bounds = array<i64: 1, 8, 32>}, {transform_indices = @transform_1, window_bounds = array<i64: 1, 8, 8>}, {pipeline_mode = #tpu.pipeline_mode<synchronous>, transform_indices = @transform_2, window_bounds = array<i64: 32, 32>}, {pipeline_mode = #tpu.pipeline_mode<synchronous>, transform_indices = @transform_3, window_bounds = array<i64: 1, 32>}, {pipeline_mode = #tpu.pipeline_mode<synchronous>, transform_indices = @transform_4, window_bounds = array<i64: 32, 32>}, {pipeline_mode = #tpu.pipeline_mode<synchronous>, transform_indices = @transform_5, window_bounds = array<i64: 1, 32>}, {pipeline_mode = #tpu.pipeline_mode<synchronous>, transform_indices = @transform_6, window_bounds = array<i64: 32, 32>}, {pipeline_mode = #tpu.pipeline_mode<synchronous>, transform_indices = @transform_7, window_bounds = array<i64: 1, 32>}, {pipeline_mode = #tpu.pipeline_mode<synchronous>, transform_indices = @transform_8, window_bounds = array<i64: 32, 32>}, {pipeline_mode = #tpu.pipeline_mode<synchronous>, transform_indices = @transform_9, window_bounds = array<i64: 1, 32>}, {pipeline_mode = #tpu.pipeline_mode<synchronous>, transform_indices = @transform_10, window_bounds = array<i64: 1, 32>}, {pipeline_mode = #tpu.pipeline_mode<synchronous>, transform_indices = @transform_11, window_bounds = array<i64: 1, 32>}, {pipeline_mode = #tpu.pipeline_mode<synchronous>, transform_indices = @transform_12, window_bounds = array<i64: 32, 64>}, {pipeline_mode = #tpu.pipeline_mode<synchronous>, transform_indices = @transform_13, window_bounds = array<i64: 1, 64>}, {pipeline_mode = #tpu.pipeline_mode<synchronous>, transform_indices = @transform_14, window_bounds = array<i64: 64, 32>}, {pipeline_mode = #tpu.pipeline_mode<synchronous>, transform_indices = @transform_15, window_bounds = array<i64: 1, 32>}, {pipeline_mode = #tpu.pipeline_mode<synchronous>, transform_indices = @transform_16, window_bounds = array<i64: 1, 32>}, {pipeline_mode = #tpu.pipeline_mode<synchronous>, transform_indices = @transform_17, window_bounds = array<i64: 1, 32>}, {transform_indices = @transform_18, window_bounds = array<i64: 1, 8, 32>}]} {
    %c0 = arith.constant 0 : index
    %c0_0 = arith.constant 0 : index
    %c0_1 = arith.constant 0 : index
    %0 = vector.load %arg1[%c0, %c0_0, %c0_1] : memref<1x8x32xf32, #tpu.memory_space<vmem>>, vector<1x8x32xf32>
    %1 = vector.shape_cast %0 : vector<1x8x32xf32> to vector<8x32xf32>
    %c0_2 = arith.constant 0 : index
    %c0_3 = arith.constant 0 : index
    %c0_4 = arith.constant 0 : index
    %2 = vector.load %arg2[%c0_2, %c0_3, %c0_4] : memref<1x8x8xf32, #tpu.memory_space<vmem>>, vector<1x8x8xf32>
    %3 = vector.shape_cast %2 : vector<1x8x8xf32> to vector<8x8xf32>
    %cst = arith.constant 5.000000e-01 : f32
    %4 = vector.broadcast %cst : f32 to vector<8x8xf32>
    %5 = arith.cmpf ogt, %3, %4 : vector<8x8xf32>
    %c0_5 = arith.constant 0 : index
    %c0_6 = arith.constant 0 : index
    %6 = vector.load %arg3[%c0_5, %c0_6] : memref<32x32xf32, #tpu.memory_space<vmem>>, vector<32x32xf32>
    %cst_7 = arith.constant dense<0.000000e+00> : vector<8x32xf32>
    %7 = tpu.matmul %1, %6, %cst_7 {dimension_numbers = #tpu.dot_dimension_numbers<[1], [0], [0], [1], [0, 0, 1, 1], [], []>} : vector<8x32xf32>, vector<32x32xf32>, vector<8x32xf32> -> vector<8x32xf32>
    %c0_8 = arith.constant 0 : index
    %c0_9 = arith.constant 0 : index
    %8 = vector.load %arg4[%c0_8, %c0_9] : memref<1x32xf32, #tpu.memory_space<vmem>>, vector<1x32xf32>
    %9 = vector.broadcast %8 : vector<1x32xf32> to vector<8x32xf32>
    %10 = arith.addf %7, %9 : vector<8x32xf32>
    %c0_10 = arith.constant 0 : index
    %c0_11 = arith.constant 0 : index
    %11 = vector.load %arg5[%c0_10, %c0_11] : memref<32x32xf32, #tpu.memory_space<vmem>>, vector<32x32xf32>
    %cst_12 = arith.constant dense<0.000000e+00> : vector<8x32xf32>
    %12 = tpu.matmul %1, %11, %cst_12 {dimension_numbers = #tpu.dot_dimension_numbers<[1], [0], [0], [1], [0, 0, 1, 1], [], []>} : vector<8x32xf32>, vector<32x32xf32>, vector<8x32xf32> -> vector<8x32xf32>
    %c0_13 = arith.constant 0 : index
    %c0_14 = arith.constant 0 : index
    %13 = vector.load %arg6[%c0_13, %c0_14] : memref<1x32xf32, #tpu.memory_space<vmem>>, vector<1x32xf32>
    %14 = vector.broadcast %13 : vector<1x32xf32> to vector<8x32xf32>
    %15 = arith.addf %12, %14 : vector<8x32xf32>
    %c0_15 = arith.constant 0 : index
    %c0_16 = arith.constant 0 : index
    %16 = vector.load %arg7[%c0_15, %c0_16] : memref<32x32xf32, #tpu.memory_space<vmem>>, vector<32x32xf32>
    %cst_17 = arith.constant dense<0.000000e+00> : vector<8x32xf32>
    %17 = tpu.matmul %1, %16, %cst_17 {dimension_numbers = #tpu.dot_dimension_numbers<[1], [0], [0], [1], [0, 0, 1, 1], [], []>} : vector<8x32xf32>, vector<32x32xf32>, vector<8x32xf32> -> vector<8x32xf32>
    %c0_18 = arith.constant 0 : index
    %c0_19 = arith.constant 0 : index
    %18 = vector.load %arg8[%c0_18, %c0_19] : memref<1x32xf32, #tpu.memory_space<vmem>>, vector<1x32xf32>
    %19 = vector.broadcast %18 : vector<1x32xf32> to vector<8x32xf32>
    %20 = arith.addf %17, %19 : vector<8x32xf32>
    %cst_20 = arith.constant 0.353553385 : f32
    %21 = vector.broadcast %cst_20 : f32 to vector<8x32xf32>
    %22 = arith.mulf %10, %21 : vector<8x32xf32>
    %cst_21 = arith.constant 0.000000e+00 : f32
    %23 = vector.broadcast %cst_21 : f32 to vector<8x32xf32>
    %24 = vector.extract_strided_slice %22 {offsets = [0, 0], sizes = [8, 8], strides = [1, 1]} : vector<8x32xf32> to vector<8x8xf32>
    %25 = vector.extract_strided_slice %15 {offsets = [0, 0], sizes = [8, 8], strides = [1, 1]} : vector<8x32xf32> to vector<8x8xf32>
    %26 = vector.extract_strided_slice %20 {offsets = [0, 0], sizes = [8, 8], strides = [1, 1]} : vector<8x32xf32> to vector<8x8xf32>
    %cst_22 = arith.constant dense<0.000000e+00> : vector<8x8xf32>
    %27 = tpu.matmul %24, %25, %cst_22 {dimension_numbers = #tpu.dot_dimension_numbers<[1], [1], [0], [0], [0, 0, 1, 0], [], []>} : vector<8x8xf32>, vector<8x8xf32>, vector<8x8xf32> -> vector<8x8xf32>
    %cst_23 = arith.constant -1.000000e+30 : f32
    %28 = vector.broadcast %cst_23 : f32 to vector<8x8xf32>
    %29 = arith.select %5, %28, %27 : vector<8x8xi1>, vector<8x8xf32>
    %cst_24 = arith.constant dense<0xFF800000> : vector<8xf32>
    %30 = vector.multi_reduction <maximumf>, %29, %cst_24 [1] : vector<8x8xf32> to vector<8xf32>
    %31 = vector.shape_cast %30 : vector<8xf32> to vector<8x1xf32>
    %32 = vector.broadcast %31 : vector<8x1xf32> to vector<8x8xf32>
    %33 = arith.subf %29, %32 : vector<8x8xf32>
    %34 = math.exp %33 : vector<8x8xf32>
    %cst_25 = arith.constant dense<0.000000e+00> : vector<8xf32>
    %35 = vector.multi_reduction <add>, %34, %cst_25 [1] : vector<8x8xf32> to vector<8xf32>
    %36 = vector.shape_cast %35 : vector<8xf32> to vector<8x1xf32>
    %37 = tpu.reciprocal %36 : vector<8x1xf32> -> vector<8x1xf32>
    %38 = vector.broadcast %37 : vector<8x1xf32> to vector<8x8xf32>
    %39 = arith.mulf %34, %38 : vector<8x8xf32>
    %c0_26 = arith.constant 0 : index
    %c0_27 = arith.constant 0 : index
    %40 = vector.load %arg9[%c0_26, %c0_27] : memref<32x32xf32, #tpu.memory_space<vmem>>, vector<8x32xf32>
    %cst_28 = arith.constant dense<0.000000e+00> : vector<8x32xf32>
    %41 = tpu.matmul %26, %40, %cst_28 {dimension_numbers = #tpu.dot_dimension_numbers<[1], [0], [0], [1], [0, 0, 1, 1], [], []>} : vector<8x8xf32>, vector<8x32xf32>, vector<8x32xf32> -> vector<8x32xf32>
    %cst_29 = arith.constant dense<0.000000e+00> : vector<8x32xf32>
    %42 = tpu.matmul %39, %41, %cst_29 {dimension_numbers = #tpu.dot_dimension_numbers<[1], [0], [0], [1], [0, 0, 1, 1], [], []>} : vector<8x8xf32>, vector<8x32xf32>, vector<8x32xf32> -> vector<8x32xf32>
    %43 = arith.addf %23, %42 : vector<8x32xf32>
    %44 = vector.extract_strided_slice %22 {offsets = [0, 8], sizes = [8, 8], strides = [1, 1]} : vector<8x32xf32> to vector<8x8xf32>
    %45 = vector.extract_strided_slice %15 {offsets = [0, 8], sizes = [8, 8], strides = [1, 1]} : vector<8x32xf32> to vector<8x8xf32>
    %46 = vector.extract_strided_slice %20 {offsets = [0, 8], sizes = [8, 8], strides = [1, 1]} : vector<8x32xf32> to vector<8x8xf32>
    %cst_30 = arith.constant dense<0.000000e+00> : vector<8x8xf32>
    %47 = tpu.matmul %44, %45, %cst_30 {dimension_numbers = #tpu.dot_dimension_numbers<[1], [1], [0], [0], [0, 0, 1, 0], [], []>} : vector<8x8xf32>, vector<8x8xf32>, vector<8x8xf32> -> vector<8x8xf32>
    %cst_31 = arith.constant -1.000000e+30 : f32
    %48 = vector.broadcast %cst_31 : f32 to vector<8x8xf32>
    %49 = arith.select %5, %48, %47 : vector<8x8xi1>, vector<8x8xf32>
    %cst_32 = arith.constant dense<0xFF800000> : vector<8xf32>
    %50 = vector.multi_reduction <maximumf>, %49, %cst_32 [1] : vector<8x8xf32> to vector<8xf32>
    %51 = vector.shape_cast %50 : vector<8xf32> to vector<8x1xf32>
    %52 = vector.broadcast %51 : vector<8x1xf32> to vector<8x8xf32>
    %53 = arith.subf %49, %52 : vector<8x8xf32>
    %54 = math.exp %53 : vector<8x8xf32>
    %cst_33 = arith.constant dense<0.000000e+00> : vector<8xf32>
    %55 = vector.multi_reduction <add>, %54, %cst_33 [1] : vector<8x8xf32> to vector<8xf32>
    %56 = vector.shape_cast %55 : vector<8xf32> to vector<8x1xf32>
    %57 = tpu.reciprocal %56 : vector<8x1xf32> -> vector<8x1xf32>
    %58 = vector.broadcast %57 : vector<8x1xf32> to vector<8x8xf32>
    %59 = arith.mulf %54, %58 : vector<8x8xf32>
    %c8 = arith.constant 8 : index
    %c0_34 = arith.constant 0 : index
    %60 = vector.load %arg9[%c8, %c0_34] : memref<32x32xf32, #tpu.memory_space<vmem>>, vector<8x32xf32>
    %cst_35 = arith.constant dense<0.000000e+00> : vector<8x32xf32>
    %61 = tpu.matmul %46, %60, %cst_35 {dimension_numbers = #tpu.dot_dimension_numbers<[1], [0], [0], [1], [0, 0, 1, 1], [], []>} : vector<8x8xf32>, vector<8x32xf32>, vector<8x32xf32> -> vector<8x32xf32>
    %cst_36 = arith.constant dense<0.000000e+00> : vector<8x32xf32>
    %62 = tpu.matmul %59, %61, %cst_36 {dimension_numbers = #tpu.dot_dimension_numbers<[1], [0], [0], [1], [0, 0, 1, 1], [], []>} : vector<8x8xf32>, vector<8x32xf32>, vector<8x32xf32> -> vector<8x32xf32>
    %63 = arith.addf %43, %62 : vector<8x32xf32>
    %64 = vector.extract_strided_slice %22 {offsets = [0, 16], sizes = [8, 8], strides = [1, 1]} : vector<8x32xf32> to vector<8x8xf32>
    %65 = vector.extract_strided_slice %15 {offsets = [0, 16], sizes = [8, 8], strides = [1, 1]} : vector<8x32xf32> to vector<8x8xf32>
    %66 = vector.extract_strided_slice %20 {offsets = [0, 16], sizes = [8, 8], strides = [1, 1]} : vector<8x32xf32> to vector<8x8xf32>
    %cst_37 = arith.constant dense<0.000000e+00> : vector<8x8xf32>
    %67 = tpu.matmul %64, %65, %cst_37 {dimension_numbers = #tpu.dot_dimension_numbers<[1], [1], [0], [0], [0, 0, 1, 0], [], []>} : vector<8x8xf32>, vector<8x8xf32>, vector<8x8xf32> -> vector<8x8xf32>
    %cst_38 = arith.constant -1.000000e+30 : f32
    %68 = vector.broadcast %cst_38 : f32 to vector<8x8xf32>
    %69 = arith.select %5, %68, %67 : vector<8x8xi1>, vector<8x8xf32>
    %cst_39 = arith.constant dense<0xFF800000> : vector<8xf32>
    %70 = vector.multi_reduction <maximumf>, %69, %cst_39 [1] : vector<8x8xf32> to vector<8xf32>
    %71 = vector.shape_cast %70 : vector<8xf32> to vector<8x1xf32>
    %72 = vector.broadcast %71 : vector<8x1xf32> to vector<8x8xf32>
    %73 = arith.subf %69, %72 : vector<8x8xf32>
    %74 = math.exp %73 : vector<8x8xf32>
    %cst_40 = arith.constant dense<0.000000e+00> : vector<8xf32>
    %75 = vector.multi_reduction <add>, %74, %cst_40 [1] : vector<8x8xf32> to vector<8xf32>
    %76 = vector.shape_cast %75 : vector<8xf32> to vector<8x1xf32>
    %77 = tpu.reciprocal %76 : vector<8x1xf32> -> vector<8x1xf32>
    %78 = vector.broadcast %77 : vector<8x1xf32> to vector<8x8xf32>
    %79 = arith.mulf %74, %78 : vector<8x8xf32>
    %c16 = arith.constant 16 : index
    %c0_41 = arith.constant 0 : index
    %80 = vector.load %arg9[%c16, %c0_41] : memref<32x32xf32, #tpu.memory_space<vmem>>, vector<8x32xf32>
    %cst_42 = arith.constant dense<0.000000e+00> : vector<8x32xf32>
    %81 = tpu.matmul %66, %80, %cst_42 {dimension_numbers = #tpu.dot_dimension_numbers<[1], [0], [0], [1], [0, 0, 1, 1], [], []>} : vector<8x8xf32>, vector<8x32xf32>, vector<8x32xf32> -> vector<8x32xf32>
    %cst_43 = arith.constant dense<0.000000e+00> : vector<8x32xf32>
    %82 = tpu.matmul %79, %81, %cst_43 {dimension_numbers = #tpu.dot_dimension_numbers<[1], [0], [0], [1], [0, 0, 1, 1], [], []>} : vector<8x8xf32>, vector<8x32xf32>, vector<8x32xf32> -> vector<8x32xf32>
    %83 = arith.addf %63, %82 : vector<8x32xf32>
    %84 = vector.extract_strided_slice %22 {offsets = [0, 24], sizes = [8, 8], strides = [1, 1]} : vector<8x32xf32> to vector<8x8xf32>
    %85 = vector.extract_strided_slice %15 {offsets = [0, 24], sizes = [8, 8], strides = [1, 1]} : vector<8x32xf32> to vector<8x8xf32>
    %86 = vector.extract_strided_slice %20 {offsets = [0, 24], sizes = [8, 8], strides = [1, 1]} : vector<8x32xf32> to vector<8x8xf32>
    %cst_44 = arith.constant dense<0.000000e+00> : vector<8x8xf32>
    %87 = tpu.matmul %84, %85, %cst_44 {dimension_numbers = #tpu.dot_dimension_numbers<[1], [1], [0], [0], [0, 0, 1, 0], [], []>} : vector<8x8xf32>, vector<8x8xf32>, vector<8x8xf32> -> vector<8x8xf32>
    %cst_45 = arith.constant -1.000000e+30 : f32
    %88 = vector.broadcast %cst_45 : f32 to vector<8x8xf32>
    %89 = arith.select %5, %88, %87 : vector<8x8xi1>, vector<8x8xf32>
    %cst_46 = arith.constant dense<0xFF800000> : vector<8xf32>
    %90 = vector.multi_reduction <maximumf>, %89, %cst_46 [1] : vector<8x8xf32> to vector<8xf32>
    %91 = vector.shape_cast %90 : vector<8xf32> to vector<8x1xf32>
    %92 = vector.broadcast %91 : vector<8x1xf32> to vector<8x8xf32>
    %93 = arith.subf %89, %92 : vector<8x8xf32>
    %94 = math.exp %93 : vector<8x8xf32>
    %cst_47 = arith.constant dense<0.000000e+00> : vector<8xf32>
    %95 = vector.multi_reduction <add>, %94, %cst_47 [1] : vector<8x8xf32> to vector<8xf32>
    %96 = vector.shape_cast %95 : vector<8xf32> to vector<8x1xf32>
    %97 = tpu.reciprocal %96 : vector<8x1xf32> -> vector<8x1xf32>
    %98 = vector.broadcast %97 : vector<8x1xf32> to vector<8x8xf32>
    %99 = arith.mulf %94, %98 : vector<8x8xf32>
    %c24 = arith.constant 24 : index
    %c0_48 = arith.constant 0 : index
    %100 = vector.load %arg9[%c24, %c0_48] : memref<32x32xf32, #tpu.memory_space<vmem>>, vector<8x32xf32>
    %cst_49 = arith.constant dense<0.000000e+00> : vector<8x32xf32>
    %101 = tpu.matmul %86, %100, %cst_49 {dimension_numbers = #tpu.dot_dimension_numbers<[1], [0], [0], [1], [0, 0, 1, 1], [], []>} : vector<8x8xf32>, vector<8x32xf32>, vector<8x32xf32> -> vector<8x32xf32>
    %cst_50 = arith.constant dense<0.000000e+00> : vector<8x32xf32>
    %102 = tpu.matmul %99, %101, %cst_50 {dimension_numbers = #tpu.dot_dimension_numbers<[1], [0], [0], [1], [0, 0, 1, 1], [], []>} : vector<8x8xf32>, vector<8x32xf32>, vector<8x32xf32> -> vector<8x32xf32>
    %103 = arith.addf %83, %102 : vector<8x32xf32>
    %c0_51 = arith.constant 0 : index
    %c0_52 = arith.constant 0 : index
    %104 = vector.load %arg10[%c0_51, %c0_52] : memref<1x32xf32, #tpu.memory_space<vmem>>, vector<1x32xf32>
    %105 = vector.broadcast %104 : vector<1x32xf32> to vector<8x32xf32>
    %106 = arith.addf %103, %105 : vector<8x32xf32>
    %107 = arith.addf %106, %1 : vector<8x32xf32>
    %c0_53 = arith.constant 0 : index
    %c0_54 = arith.constant 0 : index
    %108 = vector.load %arg11[%c0_53, %c0_54] : memref<1x32xf32, #tpu.memory_space<vmem>>, vector<1x32xf32>
    %c0_55 = arith.constant 0 : index
    %c0_56 = arith.constant 0 : index
    %109 = vector.load %arg12[%c0_55, %c0_56] : memref<1x32xf32, #tpu.memory_space<vmem>>, vector<1x32xf32>
    %cst_57 = arith.constant dense<0.000000e+00> : vector<8xf32>
    %110 = vector.multi_reduction <add>, %107, %cst_57 [1] : vector<8x32xf32> to vector<8xf32>
    %111 = vector.shape_cast %110 : vector<8xf32> to vector<8x1xf32>
    %cst_58 = arith.constant 3.200000e+01 : f32
    %112 = vector.broadcast %cst_58 : f32 to vector<8x1xf32>
    %113 = arith.divf %111, %112 : vector<8x1xf32>
    %114 = vector.broadcast %113 : vector<8x1xf32> to vector<8x32xf32>
    %115 = arith.subf %107, %114 : vector<8x32xf32>
    %116 = arith.mulf %115, %115 : vector<8x32xf32>
    %cst_59 = arith.constant dense<0.000000e+00> : vector<8xf32>
    %117 = vector.multi_reduction <add>, %116, %cst_59 [1] : vector<8x32xf32> to vector<8xf32>
    %118 = vector.shape_cast %117 : vector<8xf32> to vector<8x1xf32>
    %cst_60 = arith.constant 0.0322580636 : f32
    %119 = vector.broadcast %cst_60 : f32 to vector<8x1xf32>
    %120 = arith.mulf %118, %119 : vector<8x1xf32>
    %121 = vector.broadcast %113 : vector<8x1xf32> to vector<8x32xf32>
    %122 = arith.subf %107, %121 : vector<8x32xf32>
    %cst_61 = arith.constant 9.99999974E-6 : f32
    %123 = vector.broadcast %cst_61 : f32 to vector<8x1xf32>
    %124 = arith.addf %120, %123 : vector<8x1xf32>
    %125 = math.rsqrt %124 : vector<8x1xf32>
    %126 = vector.broadcast %125 : vector<8x1xf32> to vector<8x32xf32>
    %127 = arith.mulf %122, %126 : vector<8x32xf32>
    %128 = vector.broadcast %108 : vector<1x32xf32> to vector<8x32xf32>
    %129 = arith.mulf %127, %128 : vector<8x32xf32>
    %130 = vector.broadcast %109 : vector<1x32xf32> to vector<8x32xf32>
    %131 = arith.addf %129, %130 : vector<8x32xf32>
    %c0_62 = arith.constant 0 : index
    %c0_63 = arith.constant 0 : index
    %132 = vector.load %arg13[%c0_62, %c0_63] : memref<32x64xf32, #tpu.memory_space<vmem>>, vector<32x64xf32>
    %cst_64 = arith.constant dense<0.000000e+00> : vector<8x64xf32>
    %133 = tpu.matmul %131, %132, %cst_64 {dimension_numbers = #tpu.dot_dimension_numbers<[1], [0], [0], [1], [0, 0, 1, 1], [], []>} : vector<8x32xf32>, vector<32x64xf32>, vector<8x64xf32> -> vector<8x64xf32>
    %c0_65 = arith.constant 0 : index
    %c0_66 = arith.constant 0 : index
    %134 = vector.load %arg14[%c0_65, %c0_66] : memref<1x64xf32, #tpu.memory_space<vmem>>, vector<1x64xf32>
    %135 = vector.broadcast %134 : vector<1x64xf32> to vector<8x64xf32>
    %136 = arith.addf %133, %135 : vector<8x64xf32>
    %cst_67 = arith.constant 0.000000e+00 : f32
    %137 = vector.broadcast %cst_67 : f32 to vector<8x64xf32>
    %138 = arith.maximumf %136, %137 : vector<8x64xf32>
    %c0_68 = arith.constant 0 : index
    %c0_69 = arith.constant 0 : index
    %139 = vector.load %arg15[%c0_68, %c0_69] : memref<64x32xf32, #tpu.memory_space<vmem>>, vector<64x32xf32>
    %cst_70 = arith.constant dense<0.000000e+00> : vector<8x32xf32>
    %140 = tpu.matmul %138, %139, %cst_70 {dimension_numbers = #tpu.dot_dimension_numbers<[1], [0], [0], [1], [0, 0, 1, 1], [], []>} : vector<8x64xf32>, vector<64x32xf32>, vector<8x32xf32> -> vector<8x32xf32>
    %c0_71 = arith.constant 0 : index
    %c0_72 = arith.constant 0 : index
    %141 = vector.load %arg16[%c0_71, %c0_72] : memref<1x32xf32, #tpu.memory_space<vmem>>, vector<1x32xf32>
    %142 = vector.broadcast %141 : vector<1x32xf32> to vector<8x32xf32>
    %143 = arith.addf %140, %142 : vector<8x32xf32>
    %144 = arith.addf %143, %131 : vector<8x32xf32>
    %c0_73 = arith.constant 0 : index
    %c0_74 = arith.constant 0 : index
    %145 = vector.load %arg17[%c0_73, %c0_74] : memref<1x32xf32, #tpu.memory_space<vmem>>, vector<1x32xf32>
    %c0_75 = arith.constant 0 : index
    %c0_76 = arith.constant 0 : index
    %146 = vector.load %arg18[%c0_75, %c0_76] : memref<1x32xf32, #tpu.memory_space<vmem>>, vector<1x32xf32>
    %cst_77 = arith.constant dense<0.000000e+00> : vector<8xf32>
    %147 = vector.multi_reduction <add>, %144, %cst_77 [1] : vector<8x32xf32> to vector<8xf32>
    %148 = vector.shape_cast %147 : vector<8xf32> to vector<8x1xf32>
    %cst_78 = arith.constant 3.200000e+01 : f32
    %149 = vector.broadcast %cst_78 : f32 to vector<8x1xf32>
    %150 = arith.divf %148, %149 : vector<8x1xf32>
    %151 = vector.broadcast %150 : vector<8x1xf32> to vector<8x32xf32>
    %152 = arith.subf %144, %151 : vector<8x32xf32>
    %153 = arith.mulf %152, %152 : vector<8x32xf32>
    %cst_79 = arith.constant dense<0.000000e+00> : vector<8xf32>
    %154 = vector.multi_reduction <add>, %153, %cst_79 [1] : vector<8x32xf32> to vector<8xf32>
    %155 = vector.shape_cast %154 : vector<8xf32> to vector<8x1xf32>
    %cst_80 = arith.constant 0.0322580636 : f32
    %156 = vector.broadcast %cst_80 : f32 to vector<8x1xf32>
    %157 = arith.mulf %155, %156 : vector<8x1xf32>
    %158 = vector.broadcast %150 : vector<8x1xf32> to vector<8x32xf32>
    %159 = arith.subf %144, %158 : vector<8x32xf32>
    %cst_81 = arith.constant 9.99999974E-6 : f32
    %160 = vector.broadcast %cst_81 : f32 to vector<8x1xf32>
    %161 = arith.addf %157, %160 : vector<8x1xf32>
    %162 = math.rsqrt %161 : vector<8x1xf32>
    %163 = vector.broadcast %162 : vector<8x1xf32> to vector<8x32xf32>
    %164 = arith.mulf %159, %163 : vector<8x32xf32>
    %165 = vector.broadcast %145 : vector<1x32xf32> to vector<8x32xf32>
    %166 = arith.mulf %164, %165 : vector<8x32xf32>
    %167 = vector.broadcast %146 : vector<1x32xf32> to vector<8x32xf32>
    %168 = arith.addf %166, %167 : vector<8x32xf32>
    %169 = vector.shape_cast %168 : vector<8x32xf32> to vector<1x8x32xf32>
    %c0_82 = arith.constant 0 : index
    %c0_83 = arith.constant 0 : index
    %c0_84 = arith.constant 0 : index
    %170 = vector.load %arg19[%c0_82, %c0_83, %c0_84] : memref<1x8x32xf32, #tpu.memory_space<vmem>>, vector<1x8x32xf32>
    tpu.vector_store %arg19[%c0_82, %c0_83, %c0_84], %169 {strides = array<i32>} : memref<1x8x32xf32, #tpu.memory_space<vmem>>, vector<1x8x32xf32>,
    return
  }
  func.func @transform_0(%arg0: i32) -> (i32, i32, i32) {
    %c0_i32 = arith.constant 0 : i32
    %c0_i32_0 = arith.constant 0 : i32
    %c0_i32_1 = arith.constant 0 : i32
    return %arg0, %c0_i32, %c0_i32_0 : i32, i32, i32
  }
  func.func @transform_1(%arg0: i32) -> (i32, i32, i32) {
    %c0_i32 = arith.constant 0 : i32
    %c0_i32_0 = arith.constant 0 : i32
    %c0_i32_1 = arith.constant 0 : i32
    return %arg0, %c0_i32, %c0_i32_0 : i32, i32, i32
  }
  func.func @transform_2(%arg0: i32) -> (i32, i32) {
    %c0_i32 = arith.constant 0 : i32
    %c0_i32_0 = arith.constant 0 : i32
    %c0_i32_1 = arith.constant 0 : i32
    return %c0_i32, %c0_i32_0 : i32, i32
  }
  func.func @transform_3(%arg0: i32) -> (i32, i32) {
    %c0_i32 = arith.constant 0 : i32
    %c0_i32_0 = arith.constant 0 : i32
    %c0_i32_1 = arith.constant 0 : i32
    return %c0_i32, %c0_i32_0 : i32, i32
  }
  func.func @transform_4(%arg0: i32) -> (i32, i32) {
    %c0_i32 = arith.constant 0 : i32
    %c0_i32_0 = arith.constant 0 : i32
    %c0_i32_1 = arith.constant 0 : i32
    return %c0_i32, %c0_i32_0 : i32, i32
  }
  func.func @transform_5(%arg0: i32) -> (i32, i32) {
    %c0_i32 = arith.constant 0 : i32
    %c0_i32_0 = arith.constant 0 : i32
    %c0_i32_1 = arith.constant 0 : i32
    return %c0_i32, %c0_i32_0 : i32, i32
  }
  func.func @transform_6(%arg0: i32) -> (i32, i32) {
    %c0_i32 = arith.constant 0 : i32
    %c0_i32_0 = arith.constant 0 : i32
    %c0_i32_1 = arith.constant 0 : i32
    return %c0_i32, %c0_i32_0 : i32, i32
  }
  func.func @transform_7(%arg0: i32) -> (i32, i32) {
    %c0_i32 = arith.constant 0 : i32
    %c0_i32_0 = arith.constant 0 : i32
    %c0_i32_1 = arith.constant 0 : i32
    return %c0_i32, %c0_i32_0 : i32, i32
  }
  func.func @transform_8(%arg0: i32) -> (i32, i32) {
    %c0_i32 = arith.constant 0 : i32
    %c0_i32_0 = arith.constant 0 : i32
    %c0_i32_1 = arith.constant 0 : i32
    return %c0_i32, %c0_i32_0 : i32, i32
  }
  func.func @transform_9(%arg0: i32) -> (i32, i32) {
    %c0_i32 = arith.constant 0 : i32
    %c0_i32_0 = arith.constant 0 : i32
    %c0_i32_1 = arith.constant 0 : i32
    return %c0_i32, %c0_i32_0 : i32, i32
  }
  func.func @transform_10(%arg0: i32) -> (i32, i32) {
    %c0_i32 = arith.constant 0 : i32
    %c0_i32_0 = arith.constant 0 : i32
    %c0_i32_1 = arith.constant 0 : i32
    return %c0_i32, %c0_i32_0 : i32, i32
  }
  func.func @transform_11(%arg0: i32) -> (i32, i32) {
    %c0_i32 = arith.constant 0 : i32
    %c0_i32_0 = arith.constant 0 : i32
    %c0_i32_1 = arith.constant 0 : i32
    return %c0_i32, %c0_i32_0 : i32, i32
  }
  func.func @transform_12(%arg0: i32) -> (i32, i32) {
    %c0_i32 = arith.constant 0 : i32
    %c0_i32_0 = arith.constant 0 : i32
    %c0_i32_1 = arith.constant 0 : i32
    return %c0_i32, %c0_i32_0 : i32, i32
  }
  func.func @transform_13(%arg0: i32) -> (i32, i32) {
    %c0_i32 = arith.constant 0 : i32
    %c0_i32_0 = arith.constant 0 : i32
    %c0_i32_1 = arith.constant 0 : i32
    return %c0_i32, %c0_i32_0 : i32, i32
  }
  func.func @transform_14(%arg0: i32) -> (i32, i32) {
    %c0_i32 = arith.constant 0 : i32
    %c0_i32_0 = arith.constant 0 : i32
    %c0_i32_1 = arith.constant 0 : i32
    return %c0_i32, %c0_i32_0 : i32, i32
  }
  func.func @transform_15(%arg0: i32) -> (i32, i32) {
    %c0_i32 = arith.constant 0 : i32
    %c0_i32_0 = arith.constant 0 : i32
    %c0_i32_1 = arith.constant 0 : i32
    return %c0_i32, %c0_i32_0 : i32, i32
  }
  func.func @transform_16(%arg0: i32) -> (i32, i32) {
    %c0_i32 = arith.constant 0 : i32
    %c0_i32_0 = arith.constant 0 : i32
    %c0_i32_1 = arith.constant 0 : i32
    return %c0_i32, %c0_i32_0 : i32, i32
  }
  func.func @transform_17(%arg0: i32) -> (i32, i32) {
    %c0_i32 = arith.constant 0 : i32
    %c0_i32_0 = arith.constant 0 : i32
    %c0_i32_1 = arith.constant 0 : i32
    return %c0_i32, %c0_i32_0 : i32, i32
  }
  func.func @transform_18(%arg0: i32) -> (i32, i32, i32) {
    %c0_i32 = arith.constant 0 : i32
    %c0_i32_0 = arith.constant 0 : i32
    %c0_i32_1 = arith.constant 0 : i32
    return %arg0, %c0_i32, %c0_i32_0 : i32, i32, i32
  }
}

</mosaic_0001>

<bundles_post_ra>
// kernel: tpu_custom_call.1
= control target key start
LH: loop header
LB: loop body
LE: loop exit
PB: predicated region body
PF: predicated region fallthrough
CT: control target
= control target key end

     0   :  { %s2224_s0 = inlined_call_operand.hbm [shape: f32[2,8,32], index: 0, kind: input, shape index: {}]   ;;  %s2225_s1 = inlined_call_operand.hbm [shape: f32[2,8,8], index: 1, kind: input, shape index: {}]   ;;  %s2226_s2 = inlined_call_operand.vmem [shape: f32[32,32], index: 2, kind: input, shape index: {}]   ;;  %s2227_s3 = inlined_call_operand.vmem [shape: f32[1,32], index: 3, kind: input, shape index: {}]   ;;  %s2228_s4 = inlined_call_operand.vmem [shape: f32[32,32], index: 4, kind: input, shape index: {}]   ;;  %s2229_s5 = inlined_call_operand.vmem [shape: f32[1,32], index: 5, kind: input, shape index: {}]   ;;  %s2230_s6 = inlined_call_operand.vmem [shape: f32[32,32], index: 6, kind: input, shape index: {}]   ;;  %s2231_s7 = inlined_call_operand.vmem [shape: f32[1,32], index: 7, kind: input, shape index: {}]   ;;  %s2232_s8 = inlined_call_operand.hbm [shape: f32[32,32], index: 8, kind: input, shape index: {}]   ;;  %s2233_s9 = inlined_call_operand.vmem [shape: f32[1,32], index: 9, kind: input, shape index: {}]   ;;  %s2234_s10 = inlined_call_operand.vmem [shape: f32[1,32], index: 10, kind: input, shape index: {}]   ;;  %s2235_s11 = inlined_call_operand.vmem [shape: f32[1,32], index: 11, kind: input, shape index: {}]   ;;  %s2236_s12 = inlined_call_operand.hbm [shape: f32[32,64], index: 12, kind: input, shape index: {}]   ;;  %s2237_s13 = inlined_call_operand.vmem [shape: f32[1,64], index: 13, kind: input, shape index: {}]   ;;  %s2238_s14 = inlined_call_operand.vmem [shape: f32[64,32], index: 14, kind: input, shape index: {}]   ;;  %s2239_s15 = inlined_call_operand.vmem [shape: f32[1,32], index: 15, kind: input, shape index: {}]   ;;  %s2240_s16 = inlined_call_operand.vmem [shape: f32[1,32], index: 16, kind: input, shape index: {}]   ;;  %s2241_s17 = inlined_call_operand.vmem [shape: f32[1,32], index: 17, kind: input, shape index: {}]   ;;  %s2242_s18 = inlined_call_operand.hbm [shape: f32[2,8,32], index: 18, kind: output, shape index: {}]  }
   0x1   :  { %2255 = sst [smem:[#allocation23_spill]] %s2224_s0 }
   0x2   :  { %2256 = sst [smem:[#allocation24_spill]] %s2225_s1 }
   0x3   :  { %2257 = sst [smem:[#allocation25_spill]] %s2226_s2 }
   0x4   :  { %2258 = sst [smem:[#allocation26_spill]] %s2232_s8 }
   0x5   :  { %2259 = sst [smem:[#allocation27_spill]] %s2234_s10 }
   0x6   :  { %2260 = sst [smem:[#allocation28_spill]] %s2235_s11 }
   0x7   :  { %2261 = sst [smem:[#allocation29_spill]] %s2236_s12 }
   0x8   :  { %2262 = sst [smem:[#allocation30_spill]] %s2237_s13 }
   0x9   :  { %2263 = sst [smem:[#allocation31_spill]] %s2239_s15 }
   0xa   :  { %2264 = sst [smem:[#allocation32_spill]] %s2240_s16 }
   0xb   :  { %2265 = sst [smem:[#allocation33_spill]] %s2241_s17 }
   0xc   :  { %2266 = sst [smem:[#allocation34_spill]] %s2242_s18 }
   0xd   :  { %23 = vsyncpa [#allocation3], 0 }
   0xe   :  { %25 = vsyncpa [#allocation3 + $0x1], 0 }
   0xf   :  { %26 = vsyncpa [#allocation6], 0 }
  0x10   :  { %28 = vsyncpa [#allocation6 + $0x1], 0 }
  0x11   :  { %29 = vsyncpa [#allocation9], 0 }
  0x12   :  { %30 = vsyncpa [#allocation4], 0 }
  0x13   :  { %32 = vsyncpa [#allocation4 + $0x1], 0  ;;  %s1889_s27 = smov 0   ;;  %s1891_s28 = smov 0  }
  0x14   :  { %s1893_s29 = smov 0   ;;  %s1895_s30 = smov 0  }
  0x15 LB: > { %2267 = sst [smem:[#allocation16_spill]] %s1772_s27  ;;  %s1913_s20 = sadd.s32 4294967295, %s1784_s30   ;;  %s1784_s30 = sphi %s1895_s30, %s2297_s30   ;;  %s1780_s29 = sphi %s1893_s29, %s2299_s29   ;;  %s1776_s28 = sphi %s1891_s28, %s2301_s28   ;;  %s1772_s27 = sphi %s1889_s27, %s2300_s27  }
  0x16   : > { %2268 = sst [smem:[#allocation17_spill]] %s1780_s29  ;;  %p1437_p0 = scmp.ge.s32.totalorder %s1784_s30, 1 }
  0x17   : > { %2269 = sst [smem:[#allocation18_spill]] %s1784_s30  ;;  %p59_p1 = scmp.eq.s32.totalorder %s1913_s20, 0 }
  0x18   : > { %s2270_s8 = sld [smem:[#allocation26_spill]]  ;;  %p457_p2 = scmp.lt.s32.totalorder %s1784_s30, 3 }
  0x19   : > { %s1786_s22 = smov [#allocation7]   ;;  %s2272_s12 = sld [smem:[#allocation29_spill]] }
  0x1a   : > { %p1918_p3 = pnand %p1437_p0, %p457_p2  ;;  %s488_s2 = sshll.u32 %s1786_s22, 4  ;;  %s489_s2 = int_to_ptr.vmem [resolvable:$true] %s488_s2 }
  0x1b   : > { %s1787_s26 = smov [#allocation8]   ;;  %s1788_s19 = smov 128  }
  0x1c   : > { %p1490_p4 = pneg %p1918_p3  ;;  %s511_s0 = sshll.u32 %s1787_s26, 4  ;;  %s512_s0 = int_to_ptr.vmem [resolvable:$true] %s511_s0 }
  0x1d   : > { %s1789_s22 = smov 8   ;;  %s1436_s23 = sadd.s32 4294967294, %s1784_s30  }
  0x1e   : > { %s486_s1 = sshll.u32 %s2270_s8, 4  ;;  %p1491_p6 = pnand %p1490_p4, %p59_p1  ;;  %s487_s1 = int_to_ptr.hbm [resolvable:$true] %s486_s1 }
  0x1f   : > { %s509_s25 = sshll.u32 %s2272_s12, 4  ;;  %s1932_s24 = sadd.s32 1, %s1784_s30   ;;  %s510_s25 = int_to_ptr.hbm [resolvable:$true] %s509_s25 }
  0x20   : > { %1493 = dma.hbm_to_vmem [thread:$0]  (!%p1491_p6), %s487_s1, 512, %s489_s2, [#allocation6], %s1788_s19, %s1788_s19, %s1789_s22  }
  0x21   : > { %1496 = dma.hbm_to_vmem [thread:$0]  (!%p1491_p6), %s510_s25, 512, %s512_s0, [#allocation9], %s1788_s19, %s1788_s19, %s1789_s22  }
  0x22   : > { %2273 = sst [smem:[#allocation19_spill]] %s1932_s24  ;;  %s42_s8 = ssub.s32 %s1784_s30, %s1932_s24 }
  0x23   : > { %s45_s12 = sadd.s32 1, %s1780_s29  ;;  %p43_p7 = scmp.eq.s32.totalorder %s42_s8, 0 }
  0x24   : > { %p52_p8 = scmp.ne.s32.totalorder %s1780_s29, %s1776_s28  ;;  %p53_p9 = scmp.eq.s32.totalorder %s1784_s30, 0 }
  0x25   : > { %p58_p10 = scmp.ne.s32.totalorder %s1776_s28, %s1772_s27  ;;  %p444_p13 = scmp.eq.s32.totalorder %s1913_s20, 1 }
  0x26   : > { %s1943_s26 = scalar_select %p43_p7, %s1780_s29, %s45_s12  }
  0x27   : > { %p1945_p11 = por %p53_p9, %p52_p8  ;;  %p1951_p12 = por %p59_p1, %p58_p10 }
  0x28   : > { %2274 = sst [smem:[#allocation20_spill]] %s1943_s26  ;;  %p450_p0 = scmp.eq.s32.totalorder %s1436_s23, 1 }
  0x29   : > { %p1510_p2 = scmp.lt.s32.totalorder %s1784_s30, 2  ;;  %s540_s8 = sand.u32 1, %s1780_s29  }
  0x2a   : > { %p1958_p4 = por %p444_p13, %p52_p8  ;;  %p1962_p6 = por %p450_p0, %p58_p10 }
  0x2b   : > { %s1966_s25 = sshll.u32 %s540_s8, 3  ;;  %s1442_s0 = sshll.u32 %s1784_s30, 3 }
  0x2c   : > { %s2277_s2 = scalar_select %p1958_p4, 1, 0 }
  0x2d   : > { %s2279_s12 = scalar_select %p1962_p6, 1, 0 }
  0x2e   : > { %2278 = sst [smem:[#allocation21_spill]] %s2277_s2  ;;  %s544_s27 = scalar_lea.vmem [#allocation2], %s1966_s25 }
  0x2f   : > { %2280 = sst [smem:[#allocation22_spill]] %s2279_s12  ;;  %s552_s23 = sshll.u32 %s544_s27, 4  ;;  %s553_s23 = int_to_ptr.vmem [resolvable:$true] %s552_s23 }
  0x30   : > { %s2281_s26 = sld [smem:[#allocation23_spill]]  ;;  %p1975_p7 = pnand %p1510_p2, %p1945_p11 }
  0x31   : > { %s2283_s16 = sld [smem:[#allocation24_spill]]  ;;  %s559_s13 = sand.u32 1, %s1784_s30  }
  0x32   : > { %s541_s11 = scalar_lea.sflag [#allocation3], %s540_s8  ;;  %p1650_p9 = pneg %p1975_p7 }
  0x36   : > { %s548_s24 = scalar_lea.hbm %s2281_s26, %s1442_s0 }
  0x37   : > { %s550_s18 = sshll.u32 %s548_s24, 4  ;;  %s567_s15 = scalar_lea.hbm %s2283_s16, %s1442_s0  ;;  %s551_s18 = int_to_ptr.hbm [resolvable:$true] %s550_s18 }
  0x38   : > { %s1646_s19 = sshra.s32 %s551_s18, 4  ;;  %s1653_s24 = scalar_lea.hbm %s2281_s26, 16  ;;  %s1647_s19 = int_to_ptr.hbm [resolvable:$true] %s1646_s19 }
  0x39   : > { %s1648_s22 = scalar_lea.hbm %s1647_s19, 8  ;;  %p1654_p13 = scmp.lt.s32.totalorder %s1647_s19, %s2281_s26 }
  0x3a   : > { %p1649_p8 = scmp.ne.s32.totalorder %s1647_s19, %s1648_s22  ;;  %p1655_p0 = scmp.lt.s32.totalorder %s1653_s24, %s1648_s22 }
  0x3c   : > { %p1651_p10 = pnand %p1650_p9, %p1649_p8  ;;  %p1656_p2 = por %p1655_p0, %p1654_p13 }
  0x3e   : > { %p1652_p11 = pneg %p1651_p10 }
  0x40   : > { %p1657_p5 = pnand %p1656_p2, %p1652_p11 }
  0x42   : > { %1660 = shalt.err (!%p1657_p5)
}
  0x43   : > { %1500 = dma.hbm_to_vmem [thread:$0]  (!%p1975_p7), %s551_s18, 128, %s553_s23, %s541_s11  }
  0x44   : > { %s569_s8 = sshll.u32 %s567_s15, 4  ;;  %s563_s0 = scalar_lea.vmem [#allocation5], %s1966_s25  ;;  %s570_s8 = int_to_ptr.hbm [resolvable:$true] %s569_s8 }
  0x45   : > { %s571_s30 = sshll.u32 %s563_s0, 4  ;;  %s560_s17 = scalar_lea.sflag [#allocation6], %s559_s13  ;;  %s572_s30 = int_to_ptr.vmem [resolvable:$true] %s571_s30 }
  0x46   : > { %s1676_s27 = sshra.s32 %s570_s8, 4  ;;  %s1683_s24 = scalar_lea.hbm %s2283_s16, 16  ;;  %s1677_s27 = int_to_ptr.hbm [resolvable:$true] %s1676_s27 }
  0x47   : > { %s1678_s10 = scalar_lea.hbm %s1677_s27, 8  ;;  %p1684_p5 = scmp.lt.s32.totalorder %s1677_s27, %s2283_s16 }
  0x48   : > { %p1679_p8 = scmp.ne.s32.totalorder %s1677_s27, %s1678_s10  ;;  %p1685_p13 = scmp.lt.s32.totalorder %s1683_s24, %s1678_s10 }
  0x4a   : > { %p1681_p10 = pnand %p1679_p8, %p1650_p9  ;;  %p1686_p0 = por %p1685_p13, %p1684_p5 }
  0x4c   : > { %p1682_p11 = pneg %p1681_p10 }
  0x4e   : > { %p1687_p2 = pnand %p1686_p0, %p1682_p11 }
  0x50   : > { %1690 = shalt.err (!%p1687_p2)
}
  0x51   : > { %1503 = dma.hbm_to_vmem [thread:$0]  (!%p1975_p7), %s570_s8, 128, %s572_s30, %s560_s17  }
  0x52   : > { %580 = sbr.rel (%p1918_p3) target bundleno = 1978 (0x7ba), region = 92  ;;  %s2011_s13 = sand.u32 (!%p1918_p3), 1, %s1776_s28  }
  0x53   : > { %s2014_s15 = sshll.u32 (!%p1918_p3), %s2011_s13, 3  ;;  %s583_s18 = scalar_lea.sflag (!%p1918_p3), [#allocation3], %s2011_s13 }
  0x54   : > { %s586_s10 = scalar_lea.vmem (!%p1918_p3), [#allocation2], %s2014_s15 }
  0x57   : > { %1751 = dma.done.wait (%p1951_p12), %s583_s18, 128  }
  0x58   : > { %1753 = vsyncadd (%p1951_p12), %s583_s18, 4294967168  ;;  %s592_s29 = sand.u32 1, %s1913_s20   ;;  %s596_s21 = scalar_lea.vmem [#allocation5], %s2014_s15 }
  0x59   : > { %s593_s30 = scalar_lea.sflag [#allocation6], %s592_s29 }
  0x5a   : > { %1755 = dma.done.wait (%p1951_p12), %s593_s30, 128  }
  0x5b   : > { %1757 = vsyncadd (%p1951_p12), %s593_s30, 4294967168 }
  0x5c   : > { %1759 = dma.done.wait (%p59_p1), [#allocation6], 512  }
  0x5d   : > { %1761 = vsyncadd (%p59_p1), [#allocation6], 4294966784 }
  0x5e   : > { %1763 = dma.done.wait (%p59_p1), [#allocation9], 512  }
  0x5f   : > { %1765 = vsyncadd (%p59_p1), [#allocation9], 4294966784  ;;  %v703_v0 = vld [vmem:[%s2228_s4 + $0x18] sm:$0xff]  ;;  %s2284_s17 = sld [smem:[#allocation25_spill]]  ;;  %v702_v3 = vld [vmem:[%s2228_s4 + $0x10] sm:$0xff]  ;;  %vm676_vm0 = vcmask 261120  }
  0x60   : > { %v731_v1 = vld [vmem:[%s2230_s6 + $0x18] sm:$0xff]  ;;  %720 = vmatpush.msra.mxu1 %v703_v0  ;;  %v730_v4 = vld [vmem:[%s2230_s6 + $0x10] sm:$0xff]  ;;  %v701_v6 = vld [vmem:[%s2228_s4 + $0x8] sm:$0xff]  ;;  %vm757_vm1 = vcmask 64512   ;;  %s1790_s18 = smov 112   ;;  %s1791_s29 = smov 120  }
  0x61   : > { %748 = vmatpush.msra.mxu2 %v731_v1  ;;  %v729_v7 = vld [vmem:[%s2230_s6 + $0x8] sm:$0xff]  ;;  %v700_v9 = vld [vmem:[%s2228_s4] sm:$0xff]  ;;  %s1792_s23 = smov 104   ;;  %v2101_v27 = vld [vmem:[%s596_s21] sm:$0xff]  ;;  %s2285_s30 = sld [smem:[#allocation27_spill]] }
  0x62   : > { %721 = vmatpush.msra.mxu1 %v702_v3  ;;  %v728_v10 = vld [vmem:[%s2230_s6] sm:$0xff]  ;;  %vm667_vm2 = vcmp.gt.f32.partialorder %v2101_v27, 0.5  ;;  %v886_v36 = vld [vmem:[#allocation7 + $0x8] sm:$0xff]  ;;  %v1010_v44 = vld [vmem:[#allocation7 + $0x10] sm:$0xff]  ;;  %s2286_s21 = sld [smem:[#allocation28_spill]]  ;;  %s1309_s2 = scalar_lea.sflag [#allocation4], %s2011_s13 }
  0x63   : > { %749 = vmatpush.msra.mxu2 %v730_v4  ;;  %v2074_v12 = vld [vmem:[%s586_s10] sm:$0xff]  ;;  %v1112_v46 = vld [vmem:[#allocation7 + $0x18] sm:$0xff]  ;;  %s2287_s24 = sld [smem:[#allocation30_spill]] }
  0x64   : > { %722 = vmatpush.msra.mxu1 %v701_v6  ;;  %v809_v13 = vld [vmem:[#allocation7] sm:$0xff]  ;;  %s2290_s8 = sld [smem:[#allocation34_spill]] }
  0x65   : > { %v671_v2 = vld [vmem:[%s2284_s17 + $0x18] sm:$0xff]  ;;  %v670_v5 = vld [vmem:[%s2284_s17 + $0x10] sm:$0xff]  ;;  %v669_v8 = vld [vmem:[%s2284_s17 + $0x8] sm:$0xff]  ;;  %750 = vmatpush.msra.mxu2 %v729_v7  ;;  %828 = vmatpush.msra.mxu3 %v809_v13  ;;  %s2291_s19 = sld [smem:[#allocation33_spill]] }
  0x66   : > { %692 = vmatpush.msra.mxu0 %v671_v2  ;;  %v668_v11 = vld [vmem:[%s2284_s17] sm:$0xff]  ;;  %723 = vmatpush.msra.mxu1 %v700_v9 }
  0x67   : > { %751 = vmatpush.msra.mxu2 %v728_v10  ;;  %1452 = vmatmul.msk.f32.vlgmr.msra.gmra.mxu1 %vm676_vm0, %v2074_v12  ;;  %v1554_v14 = vld [vmem:[%s2229_s5] ss:$0 sm:$0xff] }
  0x68   : > { %693 = vmatpush.msra.mxu0 %v670_v5  ;;  %1453 = vmatmul.msk.f32.vlgmr.msra.gmra.mxu2 %vm676_vm0, %v2074_v12  ;;  %v1555_v15 = vld [vmem:[%s2227_s3] ss:$0 sm:$0xff] }
  0x69   : > { %v1556_v21 = vld [vmem:[%s2231_s7] ss:$0 sm:$0xff]  ;;  %906 = vmatpush.msrb.mxu1 %v886_v36 }
  0x6a   : > { %694 = vmatpush.msra.mxu0 %v669_v8 }
  0x6b   : > { %1030 = vmatpush.msra.mxu1 %v1010_v44 }
  0x6c   : > { %695 = vmatpush.msra.mxu0 %v668_v11 }
  0x6d   : > { %1451 = vmatmul.msk.f32.vlgmr.msra.gmra.mxu0 %vm676_vm0, %v2074_v12 }
  0xe4   : > { %v725_v16 = vpop.f32.mrf.mxu1 }
  0xe5   : > { %v726_v17 = vadd.f32 %v1554_v14, %v725_v16 }
  0xe7   : > { %959 = vrot.lane.b32.xlu2 %v726_v17, %s1790_s18  ;;  %835 = vrot.lane.b32.xlu1 %v726_v17, %s1791_s29 }
  0xe8   : > { %1454 = vmatpush.xpose.msk.msrb.mxu0 %vm757_vm1, %v726_v17 }
  0xea   : > { %v697_v18 = vpop.f32.mrf.mxu0 }
  0xeb   : > { %v698_v19 = vadd.f32 %v1555_v15, %v697_v18  ;;  %v753_v22 = vpop.f32.mrf.mxu2 }
  0xec   : > { %v754_v23 = vadd.f32 %v1556_v21, %v753_v22 }
  0xed   : > { %v756_v20 = vmul.f32 0.35355338, %v698_v19 }
  0xee   : > { %1456 = vmatmul.msk.f32.vlgmr.msra.gmra.mxu3 %vm757_vm1, %v754_v23 }
  0xef   : > { %1455 = vmatmul.msk.f32.vlgmr.msrb.gmra.mxu0 %vm757_vm1, %v756_v20  ;;  %1061 = vrot.lane.b32.xlu2 %v726_v17, %s1792_s23 }
  0xf0   : > { %833 = vrot.lane.b32.xlu1 %v756_v20, %s1791_s29 }
  0xf7   : > { %887 = vrot.lane.b32.xlu2 %v754_v23, %s1791_s29  ;;  %s1473_s29 = sshll.u32 %s1913_s20, 3  ;;  %s664_s20 = scalar_lea.vmem [#allocation10], %s2014_s15 }
  0xf8   : > { %1059 = vrot.lane.b32.xlu1 %v756_v20, %s1792_s23  ;;  %s1319_s1 = scalar_lea.hbm %s2290_s8, %s1473_s29  ;;  %s1321_s10 = sshll.u32 %s664_s20, 4  ;;  %s1322_s10 = int_to_ptr.vmem [resolvable:$true] %s1321_s10 }
  0xf9   : > { %s1726_s15 = scalar_lea.hbm %s2290_s8, 16 }
  0xff   : > { %1113 = vrot.lane.b32.xlu2 %v754_v23, %s1792_s23  ;;  %s2289_s23 = sld [smem:[#allocation32_spill]] }
 0x100   : > { %1011 = vrot.lane.b32.xlu1 %v754_v23, %s1790_s18 }
 0x141   : > { %v960_v25 = vpop.permute.xlu2 %959 }
 0x149   : > { %v1062_v32 = vpop.permute.xlu2 %1061 }
 0x151   : > { %v888_v38 = vpop.permute.xlu2 %887 }
 0x152   : > { %1459 = vmatmul.msk.f32.vlgmr.msrb.gmra.mxu1 %vm757_vm1, %v888_v38 }
 0x159   : > { %v836_v24 = vpop.permute.xlu1 %835  ;;  %v1114_v61 = vpop.permute.xlu2 %1113 }
 0x15a   : > { %1457 = vmatpush.xpose.msk.msra.mxu0 %vm757_vm1, %v836_v24 }
 0x15e   : > { %1462 = vmatpush.xpose.msk.msrb.mxu0 %vm757_vm1, %v960_v25 }
 0x162   : > { %v834_v26 = vpop.permute.xlu1 %833 }
 0x163   : > { %1458 = vmatmul.msk.f32.vlgmr.msra.gmra.mxu0 %vm757_vm1, %v834_v26 }
 0x164   : > { %1132 = vmatpush.msra.mxu0 %v1112_v46 }
 0x16a   : > { %v1060_v43 = vpop.permute.xlu1 %1059 }
 0x16c   : > { %v781_v28 = vpop.f32.mrf.mxu0 }
 0x16d   : > { %v784_v29 = vsel %vm667_vm2, -1e+30, %v781_v28 }
 0x16e   : > { %v785_v30 = vsel %vm757_vm1, %v784_v29, -inf }
 0x16f   : > { %786 = vmax.xlane.f32.xlu0 %v785_v30 }
 0x171   : > { %v830_v31 = vpop.f32.mrf.mxu3 }
 0x172   : > { %952 = vmatpush.msrb.mxu3 %v830_v31  ;;  %v1012_v45 = vpop.permute.xlu1 %1011 }
 0x173   : > { %1464 = vmatmul.msk.f32.vlgmr.msra.gmra.mxu1 %vm757_vm1, %v1012_v45 }
 0x174   : > { %1466 = vmatpush.xpose.msk.msra.mxu3 %vm757_vm1, %v1062_v32 }
 0x1cf   : > { %v908_v48 = vpop.f32.mrf.mxu1 }
 0x1d0   : > { %929 = vmatpush.msrb.mxu2 %v908_v48 }
 0x1e0   : > { %v858_v35 = vpop.f32.mrf.mxu0 }
 0x1e1   : > { %v861_v37 = vsel %vm667_vm2, -1e+30, %v858_v35 }
 0x1e2   : > { %v787_v33 = vpop.xlane.xlu0 %786  ;;  %v862_v40 = vsel %vm757_vm1, %v861_v37, -inf }
 0x1e3   : > { %v788_v34 = vsub.f32 %v784_v29, %v787_v33  ;;  %863 = vmax.xlane.f32.xlu1 %v862_v40 }
 0x1e5   : > { %v789_v39 = vmul.f32 1.442695, %v788_v34 }
 0x1e7   : > { %1564 = vpow2.f32 %v789_v39 }
 0x1ed   : > { %v1565_v41 = vpop.eup %1564 }
 0x1ee   : > { %v791_v42 = vsel %vm757_vm1, %v1565_v41, 0.0 }
 0x1ef   : > { %792 = vadd.xlane.f32.xlu0 %v791_v42 }
 0x1f0   : > { %v1032_v62 = vpop.f32.mrf.mxu1 }
 0x1f1   : > { %1053 = vmatpush.msra.mxu2 %v1032_v62 }
 0x203   : > { %957 = vrot.lane.b32.xlu0 %v756_v20, %s1790_s18  ;;  %s2288_s18 = sld [smem:[#allocation31_spill]] }
 0x256   : > { %v864_v63 = vpop.xlane.xlu1 %863 }
 0x257   : > { %v865_v0 = vsub.f32 %v861_v37, %v864_v63  ;;  %v1557_v63 = vld [vmem:[%s2233_s9] ss:$0 sm:$0xff] }
 0x259   : > { %v866_v1 = vmul.f32 1.442695, %v865_v0 }
 0x262   : > { %v793_v47 = vpop.xlane.xlu0 %792 }
 0x263   : > { %1566 = vrcp.f32 %v793_v47  ;;  %v805_v52 = vand.u32 2147483648, %v793_v47  ;;  %v803_v54 = vand.u32 2147483647, %v793_v47  ;;  %vm799_vm4 = vweird.f32 %v793_v47 }
 0x264   : > { %1568 = vpow2.f32 %v866_v1 }
 0x265   : > { %v806_v56 = vor.u32 1.1754944e-38, %v805_v52  ;;  %vm804_vm6 = vcmp.eq.f32.partialorder %v803_v54, 8.507059e+37 }
 0x269   : > { %v1567_v49 = vpop.eup %1566 }
 0x26a   : > { %v795_v50 = vmul.f32 %v1567_v49, %v793_v47  ;;  %vm800_vm3 = vweird.f32 %v1567_v49  ;;  %v1569_v6 = vpop.eup %1568 }
 0x26b   : > { %vm801_vm5 = vmor %vm799_vm4, %vm800_vm3  ;;  %v868_v8 = vsel %vm757_vm1, %v1569_v6, 0.0 }
 0x26c   : > { %v796_v51 = vsub.f32 1.0, %v795_v50 }
 0x26e   : > { %v797_v53 = vmul.f32 %v1567_v49, %v796_v51 }
 0x270   : > { %v798_v55 = vadd.f32 %v1567_v49, %v797_v53 }
 0x272   : > { %v802_v57 = vsel %vm801_vm5, %v1567_v49, %v798_v55 }
 0x273   : > { %v807_v58 = vsel %vm804_vm6, %v806_v56, %v802_v57 }
 0x274   : > { %v808_v59 = vmul.f32 %v1565_v41, %v807_v58 }
 0x275   : > { %v958_v60 = vpop.permute.xlu0 %957 }
 0x276   : > { %1461 = vmatmul.msk.f32.vlgmr.msrb.gmra.mxu3 %vm757_vm1, %v808_v59  ;;  %1463 = vmatmul.msk.f32.vlgmr.msrb.gmra.mxu0 %vm757_vm1, %v958_v60 }
 0x27e   : > { %1467 = vmatmul.msk.f32.vlgmr.msra.gmra.mxu3 %vm757_vm1, %v1060_v43  ;;  %1468 = vmatmul.msk.f32.vlgmr.msra.gmra.mxu0 %vm757_vm1, %v1114_v61 }
 0x2f3   : > { %v982_v2 = vpop.f32.mrf.mxu0 }
 0x2f4   : > { %v985_v3 = vsel %vm667_vm2, -1e+30, %v982_v2 }
 0x2f5   : > { %v986_v4 = vsel %vm757_vm1, %v985_v3, -inf }
 0x2f6   : > { %987 = vmax.xlane.f32.xlu2 %v986_v4 }
 0x2f9   : > { %v2122_v5 = vpop.f32.mrf.mxu3 }
 0x2fb   : > { %v1134_v7 = vpop.f32.mrf.mxu0 }
 0x2fc   : > { %1155 = vmatpush.msrb.mxu1 %v1134_v7 }
 0x2fe   : > { %869 = vadd.xlane.f32.xlu2 %v868_v8 }
 0x301   : > { %v1084_v9 = vpop.f32.mrf.mxu3 }
 0x302   : > { %v1087_v10 = vsel %vm667_vm2, -1e+30, %v1084_v9 }
 0x303   : > { %v1088_v11 = vsel %vm757_vm1, %v1087_v10, -inf }
 0x304   : > { %1089 = vmax.xlane.f32.xlu0 %v1088_v11 }
 0x369   : > { %v988_v13 = vpop.xlane.xlu2 %987 }
 0x36a   : > { %v989_v14 = vsub.f32 %v985_v3, %v988_v13 }
 0x36c   : > { %v990_v15 = vmul.f32 1.442695, %v989_v14 }
 0x36e   : > { %1570 = vpow2.f32 %v990_v15 }
 0x371   : > { %v870_v16 = vpop.xlane.xlu2 %869 }
 0x372   : > { %1572 = vrcp.f32 %v870_v16  ;;  %v882_v25 = vand.u32 2147483648, %v870_v16  ;;  %v880_v27 = vand.u32 2147483647, %v870_v16  ;;  %vm876_vm8 = vweird.f32 %v870_v16 }
 0x374   : > { %v1571_v17 = vpop.eup %1570  ;;  %v883_v29 = vor.u32 1.1754944e-38, %v882_v25  ;;  %vm881_vm10 = vcmp.eq.f32.partialorder %v880_v27, 8.507059e+37 }
 0x375   : > { %v992_v18 = vsel %vm757_vm1, %v1571_v17, 0.0 }
 0x376   : > { %993 = vadd.xlane.f32.xlu1 %v992_v18  ;;  %v1208_v18 = vld [vmem:[#allocation8 + $0x10] sm:$0xff] }
 0x377   : > { %v1090_v19 = vpop.xlane.xlu0 %1089 }
 0x378   : > { %v1573_v20 = vpop.eup %1572  ;;  %v1091_v21 = vsub.f32 %v1087_v10, %v1090_v19  ;;  %v1207_v19 = vld [vmem:[#allocation8 + $0x8] sm:$0xff] }
 0x379   : > { %v872_v22 = vmul.f32 %v1573_v20, %v870_v16  ;;  %vm877_vm7 = vweird.f32 %v1573_v20 }
 0x37a   : > { %v1092_v23 = vmul.f32 1.442695, %v1091_v21  ;;  %vm878_vm9 = vmor %vm876_vm8, %vm877_vm7  ;;  %v1245_v21 = vld [vmem:[%s2238_s14 + $0x38] sm:$0xff]  ;;  %vm1250_vm8 = vcmask 523264  }
 0x37b   : > { %v873_v24 = vsub.f32 1.0, %v872_v22  ;;  %v1244_v22 = vld [vmem:[%s2238_s14 + $0x30] sm:$0xff]  ;;  %1262 = vmatpush.msrb.mxu3 %v1245_v21 }
 0x37c   : > { %1574 = vpow2.f32 %v1092_v23  ;;  %v1243_v23 = vld [vmem:[%s2238_s14 + $0x28] sm:$0xff] }
 0x37d   : > { %v874_v26 = vmul.f32 %v1573_v20, %v873_v24  ;;  %1263 = vmatpush.msrb.mxu3 %v1244_v22 }
 0x37f   : > { %v875_v28 = vadd.f32 %v1573_v20, %v874_v26  ;;  %v1242_v26 = vld [vmem:[%s2238_s14 + $0x20] sm:$0xff]  ;;  %1264 = vmatpush.msrb.mxu3 %v1243_v23 }
 0x381   : > { %v879_v30 = vsel %vm878_vm9, %v1573_v20, %v875_v28  ;;  %v1206_v20 = vld [vmem:[#allocation8] sm:$0xff]  ;;  %v1241_v28 = vld [vmem:[%s2238_s14 + $0x18] sm:$0xff]  ;;  %1265 = vmatpush.msrb.mxu3 %v1242_v26 }
 0x382   : > { %v1575_v31 = vpop.eup %1574  ;;  %v884_v32 = vsel %vm881_vm10, %v883_v29, %v879_v30 }
 0x383   : > { %v1094_v33 = vsel %vm757_vm1, %v1575_v31, 0.0  ;;  %v885_v34 = vmul.f32 %v1569_v6, %v884_v32  ;;  %v1793_v6 = vmov 32.0   ;;  %1266 = vmatpush.msrb.mxu3 %v1241_v28 }
 0x384   : > { %1095 = vadd.xlane.f32.xlu0 %v1094_v33 }
 0x385   : > { %1460 = vmatmul.msk.f32.vlgmr.msrb.gmra.mxu2 %vm757_vm1, %v885_v34 }
 0x3e9   : > { %v994_v35 = vpop.xlane.xlu1 %993 }
 0x3ea   : > { %1576 = vrcp.f32 %v994_v35  ;;  %v1006_v39 = vand.u32 2147483648, %v994_v35  ;;  %v1004_v41 = vand.u32 2147483647, %v994_v35  ;;  %vm1000_vm12 = vweird.f32 %v994_v35 }
 0x3ec   : > { %v1007_v44 = vor.u32 1.1754944e-38, %v1006_v39  ;;  %vm1005_vm14 = vcmp.eq.f32.partialorder %v1004_v41, 8.507059e+37  ;;  %v1240_v41 = vld [vmem:[%s2238_s14 + $0x10] sm:$0xff] }
 0x3ed   : > { %1267 = vmatpush.msrb.mxu3 %v1240_v41 }
 0x3f0   : > { %v1577_v36 = vpop.eup %1576 }
 0x3f1   : > { %v996_v37 = vmul.f32 %v1577_v36, %v994_v35  ;;  %vm1001_vm11 = vweird.f32 %v1577_v36  ;;  %v1558_v35 = vld [vmem:[%s2285_s30] ss:$0 sm:$0xff] }
 0x3f2   : > { %vm1002_vm13 = vmor %vm1000_vm12, %vm1001_vm11 }
 0x3f3   : > { %v997_v38 = vsub.f32 1.0, %v996_v37 }
 0x3f5   : > { %v998_v40 = vmul.f32 %v1577_v36, %v997_v38  ;;  %v1559_v38 = vld [vmem:[%s2286_s21] ss:$0 sm:$0xff] }
 0x3f7   : > { %v999_v42 = vadd.f32 %v1577_v36, %v998_v40  ;;  %v1096_v43 = vpop.xlane.xlu0 %1095 }
 0x3f8   : > { %1578 = vrcp.f32 %v1096_v43  ;;  %v1108_v51 = vand.u32 2147483648, %v1096_v43  ;;  %v1106_v53 = vand.u32 2147483647, %v1096_v43  ;;  %vm1102_vm2 = vweird.f32 %v1096_v43 }
 0x3f9   : > { %v1003_v45 = vsel %vm1002_vm13, %v1577_v36, %v999_v42  ;;  %1580 = vrcp.f32 %v1793_v6  ;;  %v1239_v42 = vld [vmem:[%s2238_s14 + $0x8] sm:$0xff]  ;;  %v1563_v6 = vld [vmem:[%s2291_s19] ss:$0 sm:$0xff] }
 0x3fa   : > { %v1008_v46 = vsel %vm1005_vm14, %v1007_v44, %v1003_v45  ;;  %v1109_v55 = vor.u32 1.1754944e-38, %v1108_v51  ;;  %vm1107_vm4 = vcmp.eq.f32.partialorder %v1106_v53, 8.507059e+37  ;;  %1268 = vmatpush.msrb.mxu3 %v1239_v42  ;;  %v1560_v44 = vld [vmem:[%s2287_s24] ss:$0 sm:$0xff]  ;;  %s1323_s24 = sshll.u32 %s1319_s1, 4  ;;  %s1324_s24 = int_to_ptr.hbm [resolvable:$true] %s1323_s24 }
 0x3fb   : > { %v1009_v47 = vmul.f32 %v1571_v17, %v1008_v46  ;;  %v1209_v17 = vld [vmem:[#allocation8 + $0x18] sm:$0xff]  ;;  %s1720_s11 = sshra.s32 %s1324_s24, 4  ;;  %s1721_s11 = int_to_ptr.hbm [resolvable:$true] %s1720_s11 }
 0x3fc   : > { %1229 = vmatpush.msrb.mxu2 %v1209_v17  ;;  %p1727_p7 = scmp.lt.s32.totalorder %s1721_s11, %s2290_s8 }
 0x3fd   : > { %1465 = vmatmul.msk.f32.vlgmr.msra.gmra.mxu2 %vm757_vm1, %v1009_v47 }
 0x3fe   : > { %v1579_v48 = vpop.eup %1578  ;;  %1230 = vmatpush.msrb.mxu2 %v1208_v18 }
 0x3ff   : > { %v1098_v49 = vmul.f32 %v1579_v48, %v1096_v43  ;;  %vm1103_vm15 = vweird.f32 %v1579_v48  ;;  %v1581_v7 = vpop.eup %1580  ;;  %v1238_v43 = vld [vmem:[%s2238_s14] sm:$0xff] }
 0x400   : > { %vm1104_vm3 = vmor %vm1102_vm2, %vm1103_vm15  ;;  %v1173_v8 = vmul.f32 32.0, %v1581_v7  ;;  %1231 = vmatpush.msrb.mxu2 %v1207_v19  ;;  %1269 = vmatpush.msrb.mxu3 %v1238_v43 }
 0x401   : > { %v1099_v50 = vsub.f32 1.0, %v1098_v49 }
 0x402   : > { %v1174_v9 = vsub.f32 1.0, %v1173_v8  ;;  %1232 = vmatpush.msrb.mxu2 %v1206_v20 }
 0x403   : > { %v1100_v52 = vmul.f32 %v1579_v48, %v1099_v50 }
 0x404   : > { %v1175_v10 = vmul.f32 %v1581_v7, %v1174_v9 }
 0x405   : > { %v1101_v54 = vadd.f32 %v1579_v48, %v1100_v52 }
 0x407   : > { %v1105_v56 = vsel %vm1104_vm3, %v1579_v48, %v1101_v54  ;;  %v1561_v48 = vld [vmem:[%s2288_s18] ss:$0 sm:$0xff]  ;;  %s1722_s18 = scalar_lea.hbm %s1721_s11, 8 }
 0x408   : > { %v1110_v57 = vsel %vm1107_vm4, %v1109_v55, %v1105_v56  ;;  %v931_v59 = vpop.f32.mrf.mxu2  ;;  %p1723_p1 = scmp.ne.s32.totalorder %s1721_s11, %s1722_s18  ;;  %p1728_p9 = scmp.lt.s32.totalorder %s1726_s15, %s1722_s18 }
 0x409   : > { %v1111_v58 = vmul.f32 %v1575_v31, %v1110_v57  ;;  %v955_v61 = vadd.f32 %v2122_v5, %v931_v59  ;;  %v1176_v5 = vadd.f32 %v1581_v7, %v1175_v10 }
 0x40a   : > { %p1724_p3 = pnand %p1723_p1, %p1958_p4  ;;  %p1729_p8 = por %p1728_p9, %p1727_p7 }
 0x40b   : > { %1469 = vmatmul.msk.f32.vlgmr.msrb.gmra.mxu1 %vm757_vm1, %v1111_v58  ;;  %vm1177_vm1 = vweird.f32 %v1581_v7 }
 0x40c   : > { %v2139_v11 = vsel %vm1177_vm1, %v1581_v7, %v1176_v5  ;;  %p1725_p12 = pneg %p1724_p3 }
 0x40e   : > { %p1730_p10 = pnand %p1729_p8, %p1725_p12 }
 0x480   : > { %v1055_v60 = vpop.f32.mrf.mxu2 }
 0x481   : > { %v1058_v62 = vadd.f32 %v1055_v60, %v955_v61 }
 0x488   : > { %v1157_v0 = vpop.f32.mrf.mxu1 }
 0x489   : > { %v1160_v1 = vadd.f32 %v1157_v0, %v1058_v62 }
 0x48b   : > { %v1165_v2 = vadd.f32 %v1557_v63, %v1160_v1 }
 0x48d   : > { %v1166_v3 = vadd.f32 %v1165_v2, %v2074_v12 }
 0x48f   : > { %v1169_v4 = vsel %vm676_vm0, %v1166_v3, 0.0 }
 0x490   : > { %1170 = vadd.xlane.f32.xlu2 %v1169_v4 }
 0x503   : > { %v1171_v13 = vpop.xlane.xlu2 %1170 }
 0x504   : > { %v1179_v14 = vmul.f32 %v2139_v11, %v1171_v13 }
 0x506   : > { %v1180_v15 = vsub.f32 %v1166_v3, %v1179_v14  ;;  %v1562_v3 = vld [vmem:[%s2289_s23] ss:$0 sm:$0xff] }
 0x508   : > { %v1181_v16 = vmul.f32 %v1180_v15, %v1180_v15 }
 0x50a   : > { %v1182_v12 = vsel %vm676_vm0, %v1181_v16, 0.0 }
 0x50b   : > { %1183 = vadd.xlane.f32.xlu1 %v1182_v12 }
 0x57e   : > { %v1184_v24 = vpop.xlane.xlu1 %1183 }
 0x57f   : > { %v1185_v25 = vmul.f32 0.032258064, %v1184_v24 }
 0x581   : > { %v1186_v27 = vadd.f32 1e-05, %v1185_v25 }
 0x583   : > { %1582 = vrsqrt.f32 %v1186_v27  ;;  %vm1193_vm6 = vweird.f32 %v1186_v27 }
 0x589   : > { %v1583_v29 = vpop.eup %1582 }
 0x58a   : > { %v1188_v30 = vmul.f32 %v1583_v29, %v1186_v27  ;;  %vm1194_vm5 = vweird.f32 %v1583_v29 }
 0x58b   : > { %vm1195_vm7 = vmor %vm1193_vm6, %vm1194_vm5 }
 0x58c   : > { %v1189_v31 = vmul.f32 %v1583_v29, %v1188_v30 }
 0x58e   : > { %v1190_v32 = vmul.f32 0.5, %v1189_v31 }
 0x590   : > { %v1191_v33 = vsub.f32 1.5, %v1190_v32 }
 0x592   : > { %v1192_v34 = vmul.f32 %v1583_v29, %v1191_v33 }
 0x594   : > { %v1196_v36 = vsel %vm1195_vm7, %v1583_v29, %v1192_v34 }
 0x595   : > { %v1197_v37 = vmul.f32 %v1196_v36, %v1180_v15 }
 0x597   : > { %v1201_v39 = vmul.f32 %v1558_v35, %v1197_v37 }
 0x599   : > { %v1205_v40 = vadd.f32 %v1559_v38, %v1201_v39 }
 0x59b   : > { %1470 = vmatmul.msk.f32.vlgmr.msrb.gmra.mxu2 %vm676_vm0, %v1205_v40 }
 0x61e   : > { %v1234_v45 = vpop.f32.mrf.mxu2 }
 0x61f   : > { %v1235_v46 = vadd.f32 %v1560_v44, %v1234_v45 }
 0x621   : > { %v1237_v47 = vmax.f32 %v1235_v46, 0.0 }
 0x623   : > { %1471 = vmatmul.msk.f32.vlgmr.msrb.gmra.mxu3 %vm1250_vm8, %v1237_v47 }
 0x6a6   : > { %v1271_v49 = vpop.f32.mrf.mxu3 }
 0x6a7   : > { %v1272_v50 = vadd.f32 %v1561_v48, %v1271_v49 }
 0x6a9   : > { %v1274_v51 = vadd.f32 %v1272_v50, %v1205_v40 }
 0x6ab   : > { %v1277_v52 = vsel %vm676_vm0, %v1274_v51, 0.0 }
 0x6ac   : > { %1278 = vadd.xlane.f32.xlu0 %v1277_v52 }
 0x71f   : > { %v1279_v53 = vpop.xlane.xlu0 %1278 }
 0x720   : > { %v1280_v54 = vmul.f32 %v1279_v53, %v2139_v11 }
 0x722   : > { %v1281_v55 = vsub.f32 %v1274_v51, %v1280_v54 }
 0x724   : > { %v1282_v56 = vmul.f32 %v1281_v55, %v1281_v55 }
 0x726   : > { %v1283_v57 = vsel %vm676_vm0, %v1282_v56, 0.0 }
 0x727   : > { %1284 = vadd.xlane.f32.xlu2 %v1283_v57 }
 0x79a   : > { %v1285_v58 = vpop.xlane.xlu2 %1284 }
 0x79b   : > { %v1286_v59 = vmul.f32 0.032258064, %v1285_v58 }
 0x79d   : > { %v1287_v60 = vadd.f32 1e-05, %v1286_v59 }
 0x79f   : > { %1584 = vrsqrt.f32 %v1287_v60  ;;  %vm1294_vm10 = vweird.f32 %v1287_v60 }
 0x7a5   : > { %v1585_v61 = vpop.eup %1584 }
 0x7a6   : > { %v1289_v62 = vmul.f32 %v1585_v61, %v1287_v60  ;;  %vm1295_vm9 = vweird.f32 %v1585_v61 }
 0x7a7   : > { %vm1296_vm11 = vmor %vm1294_vm10, %vm1295_vm9 }
 0x7a8   : > { %v1290_v63 = vmul.f32 %v1585_v61, %v1289_v62 }
 0x7aa   : > { %v1291_v0 = vmul.f32 0.5, %v1290_v63 }
 0x7ac   : > { %v1292_v1 = vsub.f32 1.5, %v1291_v0 }
 0x7ae   : > { %v1293_v2 = vmul.f32 %v1585_v61, %v1292_v1 }
 0x7b0   : > { %v1297_v4 = vsel %vm1296_vm11, %v1585_v61, %v1293_v2 }
 0x7b1   : > { %v1298_v7 = vmul.f32 %v1297_v4, %v1281_v55 }
 0x7b3   : > { %v1302_v8 = vmul.f32 %v1562_v3, %v1298_v7 }
 0x7b5   : > { %v1306_v9 = vadd.f32 %v1563_v6, %v1302_v8 }
 0x7b7   : > { %1307 = vst.msk [vmem:[%s664_s20] sm:$0xff] %vm676_vm0, %v1306_v9 }
 0x7b8   : > { %1733 = shalt.err (!%p1730_p10)
}
 0x7b9   : > { %1488 = dma.vmem_to_hbm [thread:$0]  (%p1958_p4), %s1322_s10, 128, %s1324_s24, %s1309_s2  }
 0x7ba PF: > { %s2293_s13 = sld [smem:[#allocation16_spill]] }
 0x7bb   : > { %s2295_s12 = sld [smem:[#allocation18_spill]] }
 0x7c0   : > { %s1335_s1 = sand.u32 1, %s2293_s13  }
 0x7c1   : > { %p2296_p11 = scmp.ge.s32.totalorder %s2295_s12, 2  ;;  %s1336_s0 = scalar_lea.sflag [#allocation4], %s1335_s1 }
 0x7c3   : > { %p1505_p5 = pnand %p2296_p11, %p1962_p6 }
 0x7c5   : > { %p1506_p13 = pneg %p1505_p5 }
 0x7c7   : > { %1767 = dma.done.wait (%p1506_p13), %s1336_s0, 128  }
 0x7c8   : > { %1769 = vsyncadd (%p1506_p13), %s1336_s0, 4294967168  ;;  %s2297_s30 = sld [smem:[#allocation19_spill]]  ;;  %s2300_s27 = smov %s1776_s28 }
 0x7c9   : > { %s2298_s19 = sld [smem:[#allocation17_spill]] }
 0x7ca   : > { %s2299_s29 = sld [smem:[#allocation20_spill]] }
 0x7ce   : > { %p35_p0 = scmp.ge.s32.totalorder %s2297_s30, 4  }
 0x7cf   : > { %s2301_s28 = smov %s2298_s19 }
 0x7d0   :  { %37 = sbr.rel (!%p35_p0) target bundleno = 21 (0x15), region = 158 }
 0x7d5   :  { %1342 = vsyncpa [#allocation3], 1 }
 0x7d6   :  { %1344 = vsyncpa [#allocation3 + $0x1], 1 }
 0x7d7   :  { %1345 = vsyncpa [#allocation6], 1 }
 0x7d8   :  { %1347 = vsyncpa [#allocation6 + $0x1], 1 }
 0x7d9   :  { %1348 = vsyncpa [#allocation9], 1 }
 0x7da   :  { %1349 = vsyncpa [#allocation4], 1 }
 0x7db   :  { %1351 = vsyncpa [#allocation4 + $0x1], 1 }

</bundles_post_ra>
